<compile_context>
chip_gen: v6e
topology: v6e:2x2x1
jax: 0.10.0
libtpu: 0.0.40
codegen_flags: <defaults>
</compile_context>

<pallas_src>
import functools

import jax
import jax.numpy as jnp
from jax.experimental import pallas as pl
from jax.experimental.pallas import tpu as pltpu


# ---------------------------------------------------------------------------
# Hardware-aware budgets.
# ---------------------------------------------------------------------------
def _vmem_capacity_bytes():
    try:
        return int(pltpu.get_tpu_info().vmem_capacity_bytes)
    except Exception:  # pragma: no cover - fallback for exotic runtimes
        return 128 * 1024 * 1024


# ---------------------------------------------------------------------------
# Linear layers (to_qkv / to_out): tiled Pallas matmul kernels.
# ---------------------------------------------------------------------------
def _linear_bias_kernel(x_ref, w_ref, b_ref, o_ref):
    o_ref[...] = (
        jnp.dot(x_ref[...], w_ref[...], preferred_element_type=jnp.float32)
        + b_ref[...]
    )


def _linear_nobias_kernel(x_ref, w_ref, o_ref):
    o_ref[...] = jnp.dot(x_ref[...], w_ref[...],
                         preferred_element_type=jnp.float32)


def pallas_linear(x2d, w_in_out, bias=None, *, tm=256, tn=None):
    """x2d: [M, K]; w_in_out: [K, Nout] (already transposed); bias: [Nout]|None."""
    M, K = x2d.shape
    _, Nout = w_in_out.shape
    tm = min(tm, M)
    cap = _vmem_capacity_bytes()
    if tn is None:
        # Keep the whole weight resident only when it comfortably fits
        # (double-buffer estimate <= ~1/3 of physical VMEM); otherwise tile the
        # output-feature axis so the resident weight block shrinks.
        tn = Nout if (2 * K * Nout * 4) <= cap // 3 else min(512, Nout)
    tn = min(tn, Nout)

    # Weight-block axis outermost so a given [K, tn] weight block is DMA'd once
    # and reused across all row tiles.
    grid = (pl.cdiv(Nout, tn), pl.cdiv(M, tm))
    x_spec = pl.BlockSpec((tm, K), lambda j, i: (i, 0))
    w_spec = pl.BlockSpec((K, tn), lambda j, i: (0, j))
    o_spec = pl.BlockSpec((tm, tn), lambda j, i: (i, j))

    est = 4 * (2 * tm * K + 2 * K * tn + 2 * tm * tn + tn)
    cp = pltpu.CompilerParams(
        dimension_semantics=("parallel", "parallel"),
        vmem_limit_bytes=int(min(int(cap * 0.75),
                                 max(32 * 1024 * 1024, 2 * est))))

    if bias is None:  # qkv_bias=False: skip the dead bias add entirely.
        return pl.pallas_call(
            _linear_nobias_kernel,
            out_shape=jax.ShapeDtypeStruct((M, Nout), jnp.float32),
            grid=grid, in_specs=[x_spec, w_spec], out_specs=o_spec,
            compiler_params=cp,
        )(x2d, w_in_out)

    b_spec = pl.BlockSpec((1, tn), lambda j, i: (0, j))
    return pl.pallas_call(
        _linear_bias_kernel,
        out_shape=jax.ShapeDtypeStruct((M, Nout), jnp.float32),
        grid=grid, in_specs=[x_spec, w_spec, b_spec], out_specs=o_spec,
        compiler_params=cp,
    )(x2d, w_in_out, bias.reshape(1, Nout))


# ---------------------------------------------------------------------------
# SoftSort_p2 on an L-chunk of feature rows.
# ---------------------------------------------------------------------------
def _softsort_P(S, tau, jlt2d, rank_iota):
    """S: [Lc, N] (row = one feature's scores over N tokens).
    jlt2d: [N, N] f32 with jlt2d[i, j] = (j < i)  (data-independent, hoisted).
    rank_iota: [N, 1] f32 iota over the rank axis (hoisted).
    Returns P_hat[Lc, N(rank), N(position)]."""
    s_i = S[:, :, None]                                        # [Lc, N(i), 1]
    s_j = S[:, None, :]                                        # [Lc, 1, N(j)]
    gt = (s_j > s_i).astype(jnp.float32)
    eq = (s_j == s_i).astype(jnp.float32)
    # Stable descending-sort rank of each position (ties broken by index).
    rank = jnp.sum(gt + eq * jlt2d[None, :, :], axis=2)        # [Lc, N] (ints)
    # sorted_desc[l, r] = S[l, i] with rank[l, i] == r  (exact f32 copy).
    onehot = (rank[:, None, :] == rank_iota[None, :, :]).astype(jnp.float32)
    sorted_desc = jnp.sum(onehot * S[:, None, :], axis=2)      # [Lc, N(r)]
    # pairwise_diff[l, r, j] = -(S[l, j] - sorted_desc[l, r])**2 / tau
    diff = S[:, None, :] - sorted_desc[:, :, None]             # [Lc, N(r), N(j)]
    e = jnp.exp(diff * diff * (-1.0 / tau))
    # logits <= 0 with an exact per-row max of 0 (sorted values are exact f32
    # copies of S), so no max-subtraction is needed; keep this path in f32.
    denom = jnp.sum(e, axis=-1, keepdims=True)                 # [Lc, N(r), 1]
    return e * pl.reciprocal(denom, approx=True)


# ---------------------------------------------------------------------------
# Esp attention core: grid = (B, H, n_l_chunks); L is an online reduction.
# ---------------------------------------------------------------------------
def _esp_attn_kernel(q_ref, k_ref, v_ref, *refs, scale, tau, temperature,
                     l_chunk, return_attn, mxu_dtype):
    if return_attn:
        attn_ref, out_ref, cost_sc, m_sc, d_sc = refs
        acc_ref = attn_ref          # accumulate in the resident attn out block
    else:
        out_ref, cost_sc, acc_ref, m_sc, d_sc = refs
        attn_ref = None

    D, N = q_ref.shape              # lane-dense [L(=head_dim), N]
    n_l = D // l_chunk              # static
    l = pl.program_id(2)

    # ---- first L-chunk of this (batch, head): cost matrix + accumulators ---
    @pl.when(l == 0)
    def _init():
        Xs = q_ref[...] * scale                                # [D, N]
        Ys = k_ref[...] * scale
        # cdist(X, Y, p=2) via the Gram identity: one MXU matmul, no [N,N,D].
        xn = jnp.sum(Xs * Xs, axis=0, keepdims=True)           # [1, N]
        yn = jnp.sum(Ys * Ys, axis=0, keepdims=True)           # [1, N]
        gram = jax.lax.dot_general(
            Xs, Ys, dimension_numbers=(((0,), (0,)), ((), ())),
            preferred_element_type=jnp.float32)                # [N(i), N(j)]
        c2 = jnp.transpose(xn) + yn - 2.0 * gram
        cost_sc[...] = jnp.sqrt(jnp.maximum(c2, 0.0))          # clamp >= 0
        acc_ref[...] = jnp.zeros((N, N), jnp.float32)
        m_sc[...] = jnp.full((1, 1), 3.0e38, jnp.float32)
        d_sc[...] = jnp.zeros((1, 1), jnp.float32)

    # ---- data-independent softsort helpers (2-D only; shared by both calls) -
    pos_i = jax.lax.broadcasted_iota(jnp.int32, (N, N), 0)
    pos_j = jax.lax.broadcasted_iota(jnp.int32, (N, N), 1)
    jlt2d = (pos_j < pos_i).astype(jnp.float32)                # [N(i), N(j)]
    rank_iota = jax.lax.broadcasted_iota(jnp.float32, (N, 1), 0)

    # ---- this L-chunk: soft-sort both score blocks, form Gamma --------------
    if n_l == 1:
        Sx = q_ref[...] * scale
        Sy = k_ref[...] * scale
    else:
        start = pl.multiple_of(l * l_chunk, l_chunk)           # 8-aligned
        Sx = q_ref[pl.ds(start, l_chunk), :] * scale           # [Lc, N]
        Sy = k_ref[pl.ds(start, l_chunk), :] * scale

    Pu = _softsort_P(Sx, tau, jlt2d, rank_iota)                # [Lc, N(r), N(i)]
    Pv = _softsort_P(Sy, tau, jlt2d, rank_iota)
    # Gamma[l, i, j] = sum_r Pu[l, r, i] * Pv[l, r, j]  (Pu^T @ Pv), contracting
    # the rank axis directly on the MXU.  NOTE: bf16 operands round swds (which
    # feeds exp(-T*(swds-m))); pass mxu_dtype=jnp.float32 for full precision.
    Gamma = jax.lax.dot_general(
        Pu.astype(mxu_dtype), Pv.astype(mxu_dtype),
        dimension_numbers=(((1,), (1,)), ((0,), (0,))),
        preferred_element_type=jnp.float32)                    # [Lc, N, N]

    # ---- online (over L-chunks) Gamma aggregation ----------------------------
    cost = cost_sc[...]
    swds = jnp.sum(jnp.sum(Gamma * cost[None, :, :], axis=2), axis=1,
                   keepdims=True)                              # [Lc, 1]
    m_chunk = jnp.min(swds, axis=0, keepdims=True)             # [1, 1]
    m_old = m_sc[...]
    m_new = jnp.minimum(m_old, m_chunk)
    # Rescale the previous accumulation when the running min improves
    # (alpha == 1 exactly when it does not).
    alpha = jnp.exp(jnp.maximum(-temperature * (m_old - m_new), -80.0))
    w = jnp.exp(-temperature * (swds - m_new))                 # [Lc, 1], <= 1
    d_sc[...] = alpha * d_sc[...] + jnp.sum(w, axis=0, keepdims=True)
    acc_ref[...] = alpha * acc_ref[...] + jnp.sum(Gamma * w[:, :, None], axis=0)
    m_sc[...] = m_new

    # ---- last L-chunk: normalize, emit attention map and (attn @ v)^T -------
    @pl.when(l == n_l - 1)
    def _finalize():
        inv_d = pl.reciprocal(d_sc[...], approx=True)          # [1, 1]
        attn = acc_ref[...] * inv_d                            # [N(i), N(j)]
        if attn_ref is not None:
            attn_ref[...] = attn
        # out^T[d, i] = sum_j v^T[d, j] * attn[i, j]  -> lane-dense [D, N] block.
        out_ref[...] = jax.lax.dot_general(
            v_ref[...].astype(mxu_dtype), attn.astype(mxu_dtype),
            dimension_numbers=(((1,), (1,)), ((), ())),
            preferred_element_type=jnp.float32)


_TEMPS_PER_L = 8  # ~live [Lc, N, N] f32 temporaries per chunk (fused estimate)


def _pick_l_chunk(d, n, budget_bytes):
    """Largest L-chunk whose ~_TEMPS_PER_L live [Lc, N, N] f32 temporaries fit
    the budget.  Lc must divide D and be a multiple of 8 (or equal D)."""
    per_l = _TEMPS_PER_L * n * n * 4
    max_lc = max(1, budget_bytes // per_l)
    if d <= max_lc:
        return d
    lc = (min(int(max_lc), d) // 8) * 8
    while lc >= 8:
        if d % lc == 0:
            return lc
        lc -= 8
    # Budget too small even for an 8-row chunk: take the SMALLEST aligned chunk
    # that divides d (never fall back to the whole head_dim).
    if d % 8 == 0:
        return 8
    return d  # head_dim not 8-aligned: single chunk is the only aligned option


def esp_attention_core(qkv_t, *, scale, tau, temperature, l_chunk=None,
                       return_attn=True, mxu_dtype=jnp.bfloat16):
    """qkv_t: [B, H, 3, D, N] (q/k/v lane-dense). Returns (attn [B,H,N,N],
    out^T [B,H,D,N]) when return_attn else out^T only."""
    B, H, three, D, N = qkv_t.shape
    assert three == 3

    cap = _vmem_capacity_bytes()
    if l_chunk is None:
        # ~1/4 of physical VMEM for per-chunk temporaries (generation aware:
        # ~16 MiB on v7x, ~32 MiB on v5e/v6e).
        l_chunk = _pick_l_chunk(D, N, cap // 4)
    if D % l_chunk != 0 or not (l_chunk == D or l_chunk % 8 == 0):
        raise ValueError(f"l_chunk={l_chunk} must divide head_dim={D} and be a "
                         "multiple of 8 (or equal head_dim)")
    n_l = D // l_chunk

    kernel = functools.partial(
        _esp_attn_kernel, scale=scale, tau=tau, temperature=temperature,
        l_chunk=l_chunk, return_attn=return_attn, mxu_dtype=mxu_dtype)

    sq = pl.Squeezed()
    q_spec = pl.BlockSpec((sq, sq, sq, D, N), lambda b, h, l: (b, h, 0, 0, 0))
    k_spec = pl.BlockSpec((sq, sq, sq, D, N), lambda b, h, l: (b, h, 1, 0, 0))
    v_spec = pl.BlockSpec((sq, sq, sq, D, N), lambda b, h, l: (b, h, 2, 0, 0))
    attn_spec = pl.BlockSpec((sq, sq, N, N), lambda b, h, l: (b, h, 0, 0))
    out_spec = pl.BlockSpec((sq, sq, D, N), lambda b, h, l: (b, h, 0, 0))

    if return_attn:
        out_shape = (jax.ShapeDtypeStruct((B, H, N, N), jnp.float32),
                     jax.ShapeDtypeStruct((B, H, D, N), jnp.float32))
        out_specs = (attn_spec, out_spec)
        scratch_shapes = [
            pltpu.VMEM((N, N), jnp.float32),   # cost matrix (cdist) per (b, h)
            pltpu.VMEM((1, 1), jnp.float32),   # running min of swds
            pltpu.VMEM((1, 1), jnp.float32),   # running softmax denominator
        ]
    else:
        out_shape = jax.ShapeDtypeStruct((B, H, D, N), jnp.float32)
        out_specs = out_spec
        scratch_shapes = [
            pltpu.VMEM((N, N), jnp.float32),   # cost matrix
            pltpu.VMEM((N, N), jnp.float32),   # weighted-Gamma accumulator
            pltpu.VMEM((1, 1), jnp.float32),   # running min of swds
            pltpu.VMEM((1, 1), jnp.float32),   # running softmax denominator
        ]

    # VMEM budget: per-chunk [Lc,N,N] temporaries + resident scratch + the
    # double-buffered I/O blocks; never request more than 75% of physical VMEM.
    resident = (N * N * 4                                   # cost scratch
                + (0 if return_attn else N * N * 4)         # acc scratch
                + 3 * 2 * D * N * 4                         # q/k/v blocks (x2)
                + (2 * N * N * 4 if return_attn else 0)     # attn out block (x2)
                + 2 * D * N * 4)                            # out block (x2)
    est = _TEMPS_PER_L * l_chunk * N * N * 4 + resident
    vmem_limit = int(min(int(cap * 0.75),
                         max(32 * 1024 * 1024, int(1.5 * est))))

    return pl.pallas_call(
        kernel,
        out_shape=out_shape,
        grid=(B, H, n_l),
        in_specs=[q_spec, k_spec, v_spec],
        out_specs=out_specs,
        scratch_shapes=scratch_shapes,
        compiler_params=pltpu.CompilerParams(
            dimension_semantics=("parallel", "parallel", "arbitrary"),
            vmem_limit_bytes=vmem_limit),
    )(qkv_t, qkv_t, qkv_t)


# ---------------------------------------------------------------------------
# Full EspAttention forward (glue in plain JAX, compute in Pallas).
# ---------------------------------------------------------------------------
def esp_attention_forward(x, params, *, heads, dim_head, tau=0.001,
                          temperature=10.0, l_chunk=None, return_attn=True,
                          mxu_dtype=jnp.bfloat16):
    B, N, dim = x.shape
    inner_dim = heads * dim_head
    scale = dim_head ** (-0.5)

    # to_qkv (qkv_bias=False -> no bias add at all).
    qkv = pallas_linear(x.reshape(B * N, dim), params["w_qkv"], bias=None)
    qkv = qkv.reshape(B, N, 3, heads, dim_head)

    # ONE combined relayout [B,N,3,H,D] -> [B,H,3,D,N] (instead of three
    # per-tensor transposes): q/k/v all arrive lane-dense, v included.
    qkv_t = jnp.transpose(qkv, (0, 3, 2, 4, 1))

    res = esp_attention_core(
        qkv_t, scale=scale, tau=tau, temperature=temperature,
        l_chunk=l_chunk, return_attn=return_attn, mxu_dtype=mxu_dtype)
    attn, out_t = res if return_attn else (None, res)

    # out_t is (attn @ v)^T = [B, H, D, N]; 'b h n d -> b n (h d)'.
    out = jnp.transpose(out_t, (0, 3, 1, 2)).reshape(B * N, inner_dim)
    # to_out = Linear(inner_dim, dim) (+ Dropout(0.0) == identity)
    out = pallas_linear(out, params["w_out"], params["b_out"]).reshape(B, N, dim)
    return out, attn


# ---------------------------------------------------------------------------
# Pure-JAX reference of the PyTorch module (for the f32 validation run).
# ---------------------------------------------------------------------------
def _reference_forward(x, params, heads, dim_head, tau, temperature):
    hi = jax.lax.Precision.HIGHEST
    B, N, dim = x.shape
    scale = dim_head ** (-0.5)
    qkv = jnp.dot(x.reshape(B * N, dim), params["w_qkv"], precision=hi)
    qkv = qkv.reshape(B, N, 3, heads, dim_head)
    q = jnp.transpose(qkv[:, :, 0], (0, 2, 1, 3)) * scale      # [B,H,N,D]
    k = jnp.transpose(qkv[:, :, 1], (0, 2, 1, 3)) * scale
    v = jnp.transpose(qkv[:, :, 2], (0, 2, 1, 3))

    def softsort(X):                                           # -> [B,H,D,N,N]
        s = jnp.transpose(X, (0, 1, 3, 2))                     # [B,H,D,N]
        srt = -jnp.sort(-s, axis=-1)                           # descending
        d = s[..., None, :] - srt[..., :, None]                # [B,H,D,N(r),N(j)]
        return jax.nn.softmax(-(d * d) / tau, axis=-1)

    Pu, Pv = softsort(q), softsort(k)
    Gamma = jnp.einsum('bhlri,bhlrj->bhlij', Pu, Pv, precision=hi)
    diff = q[:, :, :, None, :] - k[:, :, None, :, :]
    cost = jnp.sqrt(jnp.maximum(jnp.sum(diff * diff, axis=-1), 0.0))
    swds = jnp.einsum('bhlij,bhij->bhl', Gamma, cost, precision=hi)
    wgt = jax.nn.softmax(-temperature * swds, axis=-1)
    attn = jnp.einsum('bhlij,bhl->bhij', Gamma, wgt, precision=hi)
    out = jnp.einsum('bhij,bhjd->bhid', attn, v, precision=hi)
    out = jnp.transpose(out, (0, 2, 1, 3)).reshape(B * N, heads * dim_head)
    out = jnp.dot(out, params["w_out"], precision=hi) + params["b_out"]
    return out.reshape(B, N, dim), attn


if __name__ == "__main__":
    # Small deterministic example consistent with the module.
    B, N = 2, 8
    heads, dim_head = 2, 16
    dim = 32
    inner_dim = heads * dim_head

    key = jax.random.PRNGKey(0)
    k_x, k_wqkv, k_wout, k_bout = jax.random.split(key, 4)

    x = jax.random.normal(k_x, (B, N, dim), jnp.float32)

    lim_qkv = 1.0 / (dim ** 0.5)
    lim_out = 1.0 / (inner_dim ** 0.5)
    params = {
        # stored as [in, out] (transposed vs. PyTorch's [out, in])
        "w_qkv": jax.random.uniform(
            k_wqkv, (dim, 3 * inner_dim), jnp.float32, -lim_qkv, lim_qkv),
        "w_out": jax.random.uniform(
            k_wout, (inner_dim, dim), jnp.float32, -lim_out, lim_out),
        "b_out": jax.random.uniform(
            k_bout, (dim,), jnp.float32, -lim_out, lim_out),
    }

    # Default (bf16 MXU operands); l_chunk=8 -> two L-chunks of 8 exercise the
    # online aggregation over the "arbitrary" reduction grid axis.
    out, attn = esp_attention_forward(
        x, params, heads=heads, dim_head=dim_head,
        tau=0.001, temperature=10.0, l_chunk=8)
    jax.block_until_ready((out, attn))

    assert out.shape == (B, N, dim)
    assert attn.shape == (B, heads, N, N)
    assert bool(jnp.all(jnp.isfinite(out)))
    assert bool(jnp.all(jnp.isfinite(attn)))
    # Each attention map is a convex combination of transport plans; every plan
    # sums to N over all entries, so the total must be ~N per (batch, head).
    totals = jnp.sum(attn, axis=(-1, -2))
    assert bool(jnp.all(jnp.abs(totals - N) < 0.5)), totals

    # Full-precision MXU path vs. a pure-JAX reference of the PyTorch module.
    out32, attn32 = esp_attention_forward(
        x, params, heads=heads, dim_head=dim_head,
        tau=0.001, temperature=10.0, l_chunk=8, mxu_dtype=jnp.float32)
    ref_out, ref_attn = _reference_forward(x, params, heads, dim_head,
                                           0.001, 10.0)
    jax.block_until_ready((out32, attn32, ref_out, ref_attn))
    assert bool(jnp.allclose(attn32, ref_attn, atol=2e-2, rtol=2e-2)), \
        float(jnp.max(jnp.abs(attn32 - ref_attn)))
    assert bool(jnp.allclose(out32, ref_out, atol=2e-2, rtol=2e-2)), \
        float(jnp.max(jnp.abs(out32 - ref_out)))

    print("KERNEL_OK")
</pallas_src>

<mosaic_0001>
module attributes {stable_mosaic.version = 11 : i64} {
  func.func @_linear_nobias_kernel(%arg0: i32, %arg1: i32, %arg2: memref<16x32xf32, #tpu.memory_space<vmem>>, %arg3: memref<32x96xf32, #tpu.memory_space<vmem>>, %arg4: memref<16x96xf32, #tpu.memory_space<vmem>>) attributes {dimension_semantics = [#tpu.dimension_semantics<parallel>, #tpu.dimension_semantics<parallel>], iteration_bounds = array<i64: 1, 1>, scalar_prefetch = 0 : i64, scratch_operands = 0 : i64, tpu.core_type = #tpu.core_type<tc>, window_params = [{transform_indices = @transform_0, window_bounds = array<i64: 16, 32>}, {transform_indices = @transform_1, window_bounds = array<i64: 32, 96>}, {transform_indices = @transform_2, window_bounds = array<i64: 16, 96>}]} {
    %c0 = arith.constant 0 : index
    %c0_0 = arith.constant 0 : index
    %0 = vector.load %arg2[%c0, %c0_0] : memref<16x32xf32, #tpu.memory_space<vmem>>, vector<16x32xf32>
    %c0_1 = arith.constant 0 : index
    %c0_2 = arith.constant 0 : index
    %1 = vector.load %arg3[%c0_1, %c0_2] : memref<32x96xf32, #tpu.memory_space<vmem>>, vector<32x96xf32>
    %cst = arith.constant dense<0.000000e+00> : vector<16x96xf32>
    %2 = tpu.matmul %0, %1, %cst {dimension_numbers = #tpu.dot_dimension_numbers<[1], [0], [0], [1], [0, 0, 1, 1], [], []>} : vector<16x32xf32>, vector<32x96xf32>, vector<16x96xf32> -> vector<16x96xf32>
    %c0_3 = arith.constant 0 : index
    %c0_4 = arith.constant 0 : index
    %3 = vector.load %arg4[%c0_3, %c0_4] : memref<16x96xf32, #tpu.memory_space<vmem>>, vector<16x96xf32>
    tpu.vector_store %arg4[%c0_3, %c0_4], %2 {strides = array<i32>} : memref<16x96xf32, #tpu.memory_space<vmem>>, vector<16x96xf32>,
    return
  }
  func.func @transform_0(%arg0: i32, %arg1: i32) -> (i32, i32) {
    %c0_i32 = arith.constant 0 : i32
    %c0_i32_0 = arith.constant 0 : i32
    return %arg1, %c0_i32 : i32, i32
  }
  func.func @transform_1(%arg0: i32, %arg1: i32) -> (i32, i32) {
    %c0_i32 = arith.constant 0 : i32
    %c0_i32_0 = arith.constant 0 : i32
    return %c0_i32, %arg0 : i32, i32
  }
  func.func @transform_2(%arg0: i32, %arg1: i32) -> (i32, i32) {
    %c0_i32 = arith.constant 0 : i32
    return %arg1, %arg0 : i32, i32
  }
}

</mosaic_0001>

<bundles_post_ra>
// kernel: tpu_custom_call.1
= control target key start
LH: loop header
LB: loop body
LE: loop exit
PB: predicated region body
PF: predicated region fallthrough
CT: control target
= control target key end

     0   :  { %7 = vsyncpa [#allocation3], 0  ;;  %s279_s0 = inlined_call_operand.hbm [shape: f32[16,32], index: 0, kind: input, shape index: {}]   ;;  %s280_s1 = inlined_call_operand.hbm [shape: f32[32,96], index: 1, kind: input, shape index: {}]   ;;  %s281_s2 = inlined_call_operand.hbm [shape: f32[16,96], index: 2, kind: output, shape index: {}]  }
   0x1   :  { %8 = vsyncpa [#allocation6], 0 }
   0x2   :  { %9 = vsyncpa [#allocation4], 0  ;;  %s239_s9 = smov [#allocation2]  }
   0x3   :  { %s15_s10 = sshll.u32 %s239_s9, 4  ;;  %s16_s10 = int_to_ptr.vmem [resolvable:$true] %s15_s10 }
   0x4   :  { %s181_s11 = scalar_lea.vmem %s16_s10, 256  ;;  %p186_p1 = scmp.lt.s32.totalorder %s16_s10, %s16_s10 }
   0x5   :  { %p182_p0 = scmp.ne.s32.totalorder %s16_s10, %s181_s11  ;;  %p187_p2 = scmp.lt.s32.totalorder %s181_s11, %s181_s11 }
   0x7   :  { %p188_p3 = por %p187_p2, %p186_p1 }
   0x9   :  { %p189_p4 = pnand %p188_p3, %p182_p0 }
   0xb   :  { %192 = shalt.err (!%p189_p4)
}
   0xc   :  { %s240_s12 = smov 128   ;;  %s241_s13 = smov 8  }
   0xd   :  { %21 = dma.hbm_to_vmem [thread:$0]  %s279_s0, 256, %s16_s10, [#allocation3], %s240_s12, %s240_s12, %s241_s13  }
   0xe   :  { %s242_s16 = smov [#allocation5]  }
   0xf   :  { %s27_s17 = sshll.u32 %s242_s16, 4  ;;  %s28_s17 = int_to_ptr.vmem [resolvable:$true] %s27_s17 }
  0x10   :  { %s201_s18 = scalar_lea.vmem %s28_s17, 512  ;;  %p206_p6 = scmp.lt.s32.totalorder %s28_s17, %s28_s17 }
  0x11   :  { %p202_p5 = scmp.ne.s32.totalorder %s28_s17, %s201_s18  ;;  %p207_p7 = scmp.lt.s32.totalorder %s201_s18, %s201_s18 }
  0x13   :  { %p208_p8 = por %p207_p7, %p206_p6 }
  0x15   :  { %p209_p9 = pnand %p208_p8, %p202_p5 }
  0x17   :  { %212 = shalt.err (!%p209_p9)
}
  0x18   :  { %33 = dma.hbm_to_vmem [thread:$0]  %s280_s1, 512, %s28_s17, [#allocation6], %s240_s12, %s240_s12, %s241_s13  }
  0x19   :  { %233 = dma.done.wait [#allocation3], 256  }
  0x1a   :  { %234 = vsyncadd [#allocation3], 4294967040 }
  0x1b   :  { %235 = dma.done.wait [#allocation6], 512  }
  0x1c   :  { %236 = vsyncadd [#allocation6], 4294966784  ;;  %vm46_vm0 = vcmask 261120   ;;  %v45_v0 = vld [vmem:[#allocation5 + $0x18] sm:$0xff]  ;;  %v44_v1 = vld [vmem:[#allocation5 + $0x10] sm:$0xff]  ;;  %vm128_vm1 = vcmask 785408  }
  0x1d   :  { %157 = vmatprep.subr.mxu0 %v45_v0  ;;  %v40_v2 = vld [vmem:[#allocation2] sm:$0xff]  ;;  %v43_v3 = vld [vmem:[#allocation5 + $0x8] sm:$0xff]  ;;  %v42_v4 = vld [vmem:[#allocation5] sm:$0xff]  ;;  %s243_s0 = smov [#allocation7]  }
  0x1e   :  { %158 = vmatpush3.msra.mxu0 %v45_v0  ;;  %165 = vmatprep.mubr.msk.f32.mxu0 %vm46_vm0, %v40_v2  ;;  %v41_v5 = vld [vmem:[#allocation2 + $0x8] sm:$0xff]  ;;  %s136_s1 = sshll.u32 %s243_s0, 4  ;;  %s137_s1 = int_to_ptr.vmem [resolvable:$true] %s136_s1 }
  0x1f   :  { %159 = vmatprep.subr.mxu0 %v44_v1  ;;  %s213_s21 = scalar_lea.vmem %s137_s1, 256  ;;  %p218_p11 = scmp.lt.s32.totalorder %s137_s1, %s137_s1 }
  0x20   :  { %160 = vmatpush3.msra.mxu0 %v44_v1  ;;  %p214_p10 = scmp.ne.s32.totalorder %s137_s1, %s213_s21  ;;  %p219_p12 = scmp.lt.s32.totalorder %s213_s21, %s213_s21 }
  0x21   :  { %161 = vmatprep.subr.mxu0 %v43_v3 }
  0x22   :  { %162 = vmatpush3.msra.mxu0 %v43_v3  ;;  %p220_p13 = por %p219_p12, %p218_p11 }
  0x23   :  { %163 = vmatprep.subr.mxu0 %v42_v4 }
  0x24   :  { %164 = vmatpush3.msra.mxu0 %v42_v4  ;;  %p221_p0 = pnand %p220_p13, %p214_p10 }
  0x25   :  { %166 = vmatmul.mubr.msk.f32.vlgmr.msra.gmra.mxu0 %vm46_vm0, %v41_v5 }
  0xe5   :  { %v167_v6 = vpop.f32.mrf.mxu0 }
  0xe6   :  { %130 = vst.msk [vmem:[#allocation7 + $0x8] sm:$0xff] %vm128_vm1, %v167_v6 }
  0xe7   :  { %v119_v7 = vpop.f32.mrf.mxu0 }
  0xe8   :  { %129 = vst.msk [vmem:[#allocation7] sm:$0xff] %vm128_vm1, %v119_v7 }
  0xe9   :  { %224 = shalt.err (!%p221_p0)
}
  0xea   :  { %142 = dma.vmem_to_hbm [thread:$0]  %s137_s1, 256, %s281_s2, [#allocation4], %s240_s12, %s240_s12, %s241_s13  }
  0xeb   :  { %237 = dma.done.wait [#allocation4], 256  }
  0xec   :  { %238 = vsyncadd [#allocation4], 4294967040 }
  0xed   :  { %146 = vsyncpa [#allocation3], 1 }
  0xee   :  { %147 = vsyncpa [#allocation6], 1 }
  0xef   :  { %148 = vsyncpa [#allocation4], 1 }

</bundles_post_ra>
